<compile_context>
chip_gen: v6e
topology: v6e:2x2x1
jax: 0.10.0
libtpu: 0.0.40
codegen_flags: <defaults>
</compile_context>

<pallas_src>
import functools

import jax
import jax.numpy as jnp
from jax.experimental import pallas as pl
from jax.experimental.pallas import tpu as pltpu

H1 = 128      # fc1 out features
H2 = 256      # fc2 out features
LANE = 128    # TPU lane width


def _round_up(n, m):
    return ((n + m - 1) // m) * m


def _choose_tb(batch, input_size, act_budget_bytes=16 << 20):
    """Batch-tile rows, budgeted against VMEM.

    Accounts for: the f32 x tile being lane-padded to a multiple of 128 and
    double buffered, plus the h1/h2/logits/exp f32 temporaries per row.
    """
    per_row = 2 * 4 * _round_up(input_size, LANE)      # x tile, 2 buffers
    per_row += 4 * (H1 + H2 + 2 * LANE)                # activation temps
    cap = max(8, min(act_budget_bytes // per_row, 4096))
    cap = (cap // 8) * 8
    return min(_round_up(batch, 8), cap)


def actor_kernel(x_ref, w1_ref, b1_ref, w2_ref, b2_ref, w3_ref, b3_ref, o_ref,
                 *, output_size):
    # fc1 + ReLU  (bf16 x bf16 -> f32 accumulate on the MXU)
    x = x_ref[...].astype(jnp.bfloat16)
    h1 = jnp.dot(x, w1_ref[...], preferred_element_type=jnp.float32) + b1_ref[...]
    h1 = jnp.maximum(h1, 0.0).astype(jnp.bfloat16)

    # fc2 + ReLU
    h2 = jnp.dot(h1, w2_ref[...], preferred_element_type=jnp.float32) + b2_ref[...]
    h2 = jnp.maximum(h2, 0.0).astype(jnp.bfloat16)

    # fc3 on a lane-dense 128-wide padded tile (padded weight/bias cols are 0)
    logits = jnp.dot(h2, w3_ref[...], preferred_element_type=jnp.float32) + b3_ref[...]

    # Mask padded columns to -inf so they contribute nothing to the softmax.
    col = jax.lax.broadcasted_iota(jnp.int32, logits.shape, dimension=1)
    logits = jnp.where(col < output_size, logits, -jnp.inf)

    # Numerically stable softmax over dim=1 with EXACT normalization.
    m = jnp.max(logits, axis=-1, keepdims=True)
    e = jnp.exp(logits - m)
    denom = jnp.sum(e, axis=-1, keepdims=True)
    probs = e / denom

    # Store only the real columns (masked vst, 1/16th of the padded bytes).
    o_ref[...] = probs[:, :output_size].astype(o_ref.dtype)


@functools.partial(jax.jit, static_argnames=("output_size",))
def actor_forward(x, params, output_size):
    w1, b1, w2, b2, w3p, b3p = params        # w3p/b3p already lane-padded
    batch, input_size = x.shape
    n_pad = w3p.shape[1]

    tb = _choose_tb(batch, input_size)
    grid = (pl.cdiv(batch, tb),)             # no materialized batch padding

    resident = lambda i: (0, 0)              # weights/biases stay VMEM resident

    flops = 2 * batch * (input_size * H1 + H1 * H2 + H2 * n_pad)
    bytes_accessed = (x.size * 4
                      + (w1.size + w2.size + w3p.size) * 2     # bf16 weights
                      + (b1.size + b2.size + b3p.size) * 4
                      + batch * output_size * 4)

    out = pl.pallas_call(
        functools.partial(actor_kernel, output_size=output_size),
        out_shape=jax.ShapeDtypeStruct((batch, output_size), jnp.float32),
        grid=grid,
        in_specs=[
            pl.BlockSpec((tb, input_size), lambda i: (i, 0)),   # x tile
            pl.BlockSpec((input_size, H1), resident),           # w1 (bf16)
            pl.BlockSpec((1, H1), resident),                    # b1
            pl.BlockSpec((H1, H2), resident),                   # w2 (bf16)
            pl.BlockSpec((1, H2), resident),                    # b2
            pl.BlockSpec((H2, n_pad), resident),                # w3 (bf16, padded)
            pl.BlockSpec((1, n_pad), resident),                 # b3 (padded)
        ],
        out_specs=pl.BlockSpec((tb, output_size), lambda i: (i, 0)),
        compiler_params=pltpu.CompilerParams(
            dimension_semantics=("parallel",),   # shard batch tiles across TCs
            vmem_limit_bytes=32 << 20),
        cost_estimate=pl.CostEstimate(
            flops=flops,
            transcendentals=batch * n_pad,
            bytes_accessed=bytes_accessed),
    )(x, w1, b1, w2, b2, w3p, b3p)

    return out


def init_params(key, input_size, output_size):
    """Deterministic init mimicking nn.Linear default (uniform +-1/sqrt(fan_in)).

    Weights stored as (in, out) in bf16; biases as (1, out) f32 rows.
    The fc3 weight/bias are lane-padded to a multiple of 128 ONCE here
    (padded columns are zero), so no per-call padding happens at forward time.
    """
    def linear(k, fan_in, fan_out):
        k_w, k_b = jax.random.split(k)
        bound = 1.0 / jnp.sqrt(fan_in)
        w = jax.random.uniform(k_w, (fan_in, fan_out), jnp.float32, -bound, bound)
        b = jax.random.uniform(k_b, (1, fan_out), jnp.float32, -bound, bound)
        return w.astype(jnp.bfloat16), b

    k1, k2, k3 = jax.random.split(key, 3)
    w1, b1 = linear(k1, input_size, H1)
    w2, b2 = linear(k2, H1, H2)
    w3, b3 = linear(k3, H2, output_size)

    n_pad = _round_up(output_size, LANE)
    w3p = jnp.pad(w3, ((0, 0), (0, n_pad - output_size)))
    b3p = jnp.pad(b3, ((0, 0), (0, n_pad - output_size)))
    return (w1, b1, w2, b2, w3p, b3p)


def reference_forward(x, params, output_size):
    """Pure-JAX reference with the same bf16-weight / f32-accumulate math."""
    w1, b1, w2, b2, w3p, b3p = params
    h1 = jax.nn.relu(jnp.dot(x.astype(jnp.bfloat16), w1,
                             preferred_element_type=jnp.float32) + b1)
    h2 = jax.nn.relu(jnp.dot(h1.astype(jnp.bfloat16), w2,
                             preferred_element_type=jnp.float32) + b2)
    logits = (jnp.dot(h2.astype(jnp.bfloat16), w3p,
                      preferred_element_type=jnp.float32) + b3p)[:, :output_size]
    return jax.nn.softmax(logits, axis=1)


if __name__ == "__main__":
    key = jax.random.PRNGKey(0)
    k_x, k_p = jax.random.split(key)

    batch = 8
    input_size = 32
    output_size = 8

    x = jax.random.normal(k_x, (batch, input_size), jnp.float32)
    params = init_params(k_p, input_size, output_size)

    out = actor_forward(x, params, output_size)
    out = jax.block_until_ready(out)

    ref = reference_forward(x, params, output_size)
    assert out.shape == (batch, output_size)
    # bf16 weight storage => compare against the matching bf16 reference.
    assert jnp.allclose(out, ref, atol=2e-3, rtol=2e-3), (
        f"max abs diff = {jnp.max(jnp.abs(out - ref))}")
    # Exact f32 normalization: rows sum to 1 to float32 roundoff.
    assert jnp.allclose(jnp.sum(out, axis=1), jnp.ones((batch,)), atol=1e-4)

    print("KERNEL_OK")
</pallas_src>

<mosaic_0001>
module attributes {stable_mosaic.version = 11 : i64} {
  func.func @actor_kernel(%arg0: i32, %arg1: memref<8x32xf32, #tpu.memory_space<vmem>>, %arg2: memref<32x128xbf16, #tpu.memory_space<vmem>>, %arg3: memref<1x128xf32, #tpu.memory_space<vmem>>, %arg4: memref<128x256xbf16, #tpu.memory_space<vmem>>, %arg5: memref<1x256xf32, #tpu.memory_space<vmem>>, %arg6: memref<256x128xbf16, #tpu.memory_space<vmem>>, %arg7: memref<1x128xf32, #tpu.memory_space<vmem>>, %arg8: memref<8x8xf32, #tpu.memory_space<vmem>>) attributes {dimension_semantics = [#tpu.dimension_semantics<parallel>], iteration_bounds = array<i64: 1>, scalar_prefetch = 0 : i64, scratch_operands = 0 : i64, tpu.core_type = #tpu.core_type<tc>, window_params = [{transform_indices = @transform_0, window_bounds = array<i64: 8, 32>}, {pipeline_mode = #tpu.pipeline_mode<synchronous>, transform_indices = @transform_1, window_bounds = array<i64: 32, 128>}, {pipeline_mode = #tpu.pipeline_mode<synchronous>, transform_indices = @transform_2, window_bounds = array<i64: 1, 128>}, {pipeline_mode = #tpu.pipeline_mode<synchronous>, transform_indices = @transform_3, window_bounds = array<i64: 128, 256>}, {pipeline_mode = #tpu.pipeline_mode<synchronous>, transform_indices = @transform_4, window_bounds = array<i64: 1, 256>}, {pipeline_mode = #tpu.pipeline_mode<synchronous>, transform_indices = @transform_5, window_bounds = array<i64: 256, 128>}, {pipeline_mode = #tpu.pipeline_mode<synchronous>, transform_indices = @transform_6, window_bounds = array<i64: 1, 128>}, {transform_indices = @transform_7, window_bounds = array<i64: 8, 8>}]} {
    %c0 = arith.constant 0 : index
    %c0_0 = arith.constant 0 : index
    %0 = vector.load %arg1[%c0, %c0_0] : memref<8x32xf32, #tpu.memory_space<vmem>>, vector<8x32xf32>
    %1 = arith.truncf %0 : vector<8x32xf32> to vector<8x32xbf16>
    %c0_1 = arith.constant 0 : index
    %c0_2 = arith.constant 0 : index
    %2 = vector.load %arg2[%c0_1, %c0_2] : memref<32x128xbf16, #tpu.memory_space<vmem>>, vector<32x128xbf16>
    %cst = arith.constant dense<0.000000e+00> : vector<8x128xf32>
    %3 = tpu.matmul %1, %2, %cst {dimension_numbers = #tpu.dot_dimension_numbers<[1], [0], [0], [1], [0, 0, 1, 1], [], []>} : vector<8x32xbf16>, vector<32x128xbf16>, vector<8x128xf32> -> vector<8x128xf32>
    %c0_3 = arith.constant 0 : index
    %c0_4 = arith.constant 0 : index
    %4 = vector.load %arg3[%c0_3, %c0_4] : memref<1x128xf32, #tpu.memory_space<vmem>>, vector<1x128xf32>
    %5 = vector.broadcast %4 : vector<1x128xf32> to vector<8x128xf32>
    %6 = arith.addf %3, %5 : vector<8x128xf32>
    %cst_5 = arith.constant 0.000000e+00 : f32
    %7 = vector.broadcast %cst_5 : f32 to vector<8x128xf32>
    %8 = arith.maximumf %6, %7 : vector<8x128xf32>
    %9 = arith.truncf %8 : vector<8x128xf32> to vector<8x128xbf16>
    %c0_6 = arith.constant 0 : index
    %c0_7 = arith.constant 0 : index
    %10 = vector.load %arg4[%c0_6, %c0_7] : memref<128x256xbf16, #tpu.memory_space<vmem>>, vector<128x256xbf16>
    %cst_8 = arith.constant dense<0.000000e+00> : vector<8x256xf32>
    %11 = tpu.matmul %9, %10, %cst_8 {dimension_numbers = #tpu.dot_dimension_numbers<[1], [0], [0], [1], [0, 0, 1, 1], [], []>} : vector<8x128xbf16>, vector<128x256xbf16>, vector<8x256xf32> -> vector<8x256xf32>
    %c0_9 = arith.constant 0 : index
    %c0_10 = arith.constant 0 : index
    %12 = vector.load %arg5[%c0_9, %c0_10] : memref<1x256xf32, #tpu.memory_space<vmem>>, vector<1x256xf32>
    %13 = vector.broadcast %12 : vector<1x256xf32> to vector<8x256xf32>
    %14 = arith.addf %11, %13 : vector<8x256xf32>
    %cst_11 = arith.constant 0.000000e+00 : f32
    %15 = vector.broadcast %cst_11 : f32 to vector<8x256xf32>
    %16 = arith.maximumf %14, %15 : vector<8x256xf32>
    %17 = arith.truncf %16 : vector<8x256xf32> to vector<8x256xbf16>
    %c0_12 = arith.constant 0 : index
    %c0_13 = arith.constant 0 : index
    %18 = vector.load %arg6[%c0_12, %c0_13] : memref<256x128xbf16, #tpu.memory_space<vmem>>, vector<256x128xbf16>
    %cst_14 = arith.constant dense<0.000000e+00> : vector<8x128xf32>
    %19 = tpu.matmul %17, %18, %cst_14 {dimension_numbers = #tpu.dot_dimension_numbers<[1], [0], [0], [1], [0, 0, 1, 1], [], []>} : vector<8x256xbf16>, vector<256x128xbf16>, vector<8x128xf32> -> vector<8x128xf32>
    %c0_15 = arith.constant 0 : index
    %c0_16 = arith.constant 0 : index
    %20 = vector.load %arg7[%c0_15, %c0_16] : memref<1x128xf32, #tpu.memory_space<vmem>>, vector<1x128xf32>
    %21 = vector.broadcast %20 : vector<1x128xf32> to vector<8x128xf32>
    %22 = arith.addf %19, %21 : vector<8x128xf32>
    %23 = tpu.iota {dimensions = array<i32: 1>} : vector<8x128xi32>
    %c8_i32 = arith.constant 8 : i32
    %24 = vector.broadcast %c8_i32 : i32 to vector<8x128xi32>
    %25 = arith.cmpi slt, %23, %24 : vector<8x128xi32>
    %cst_17 = arith.constant 0xFF800000 : f32
    %26 = vector.broadcast %cst_17 : f32 to vector<8x128xf32>
    %27 = arith.select %25, %22, %26 : vector<8x128xi1>, vector<8x128xf32>
    %cst_18 = arith.constant dense<0xFF800000> : vector<8xf32>
    %28 = vector.multi_reduction <maximumf>, %27, %cst_18 [1] : vector<8x128xf32> to vector<8xf32>
    %29 = vector.shape_cast %28 : vector<8xf32> to vector<8x1xf32>
    %30 = vector.broadcast %29 : vector<8x1xf32> to vector<8x128xf32>
    %31 = arith.subf %27, %30 : vector<8x128xf32>
    %32 = math.exp %31 : vector<8x128xf32>
    %cst_19 = arith.constant dense<0.000000e+00> : vector<8xf32>
    %33 = vector.multi_reduction <add>, %32, %cst_19 [1] : vector<8x128xf32> to vector<8xf32>
    %34 = vector.shape_cast %33 : vector<8xf32> to vector<8x1xf32>
    %35 = vector.broadcast %34 : vector<8x1xf32> to vector<8x128xf32>
    %36 = arith.divf %32, %35 : vector<8x128xf32>
    %37 = vector.extract_strided_slice %36 {offsets = [0, 0], sizes = [8, 8], strides = [1, 1]} : vector<8x128xf32> to vector<8x8xf32>
    %c0_20 = arith.constant 0 : index
    %c0_21 = arith.constant 0 : index
    %38 = vector.load %arg8[%c0_20, %c0_21] : memref<8x8xf32, #tpu.memory_space<vmem>>, vector<8x8xf32>
    tpu.vector_store %arg8[%c0_20, %c0_21], %37 {strides = array<i32>} : memref<8x8xf32, #tpu.memory_space<vmem>>, vector<8x8xf32>,
    return
  }
  func.func @transform_0(%arg0: i32) -> (i32, i32) {
    %c0_i32 = arith.constant 0 : i32
    %c0_i32_0 = arith.constant 0 : i32
    return %arg0, %c0_i32 : i32, i32
  }
  func.func @transform_1(%arg0: i32) -> (i32, i32) {
    %c0_i32 = arith.constant 0 : i32
    %c0_i32_0 = arith.constant 0 : i32
    %c0_i32_1 = arith.constant 0 : i32
    return %c0_i32, %c0_i32_0 : i32, i32
  }
  func.func @transform_2(%arg0: i32) -> (i32, i32) {
    %c0_i32 = arith.constant 0 : i32
    %c0_i32_0 = arith.constant 0 : i32
    %c0_i32_1 = arith.constant 0 : i32
    return %c0_i32, %c0_i32_0 : i32, i32
  }
  func.func @transform_3(%arg0: i32) -> (i32, i32) {
    %c0_i32 = arith.constant 0 : i32
    %c0_i32_0 = arith.constant 0 : i32
    %c0_i32_1 = arith.constant 0 : i32
    return %c0_i32, %c0_i32_0 : i32, i32
  }
  func.func @transform_4(%arg0: i32) -> (i32, i32) {
    %c0_i32 = arith.constant 0 : i32
    %c0_i32_0 = arith.constant 0 : i32
    %c0_i32_1 = arith.constant 0 : i32
    return %c0_i32, %c0_i32_0 : i32, i32
  }
  func.func @transform_5(%arg0: i32) -> (i32, i32) {
    %c0_i32 = arith.constant 0 : i32
    %c0_i32_0 = arith.constant 0 : i32
    %c0_i32_1 = arith.constant 0 : i32
    return %c0_i32, %c0_i32_0 : i32, i32
  }
  func.func @transform_6(%arg0: i32) -> (i32, i32) {
    %c0_i32 = arith.constant 0 : i32
    %c0_i32_0 = arith.constant 0 : i32
    %c0_i32_1 = arith.constant 0 : i32
    return %c0_i32, %c0_i32_0 : i32, i32
  }
  func.func @transform_7(%arg0: i32) -> (i32, i32) {
    %c0_i32 = arith.constant 0 : i32
    %c0_i32_0 = arith.constant 0 : i32
    return %arg0, %c0_i32 : i32, i32
  }
}

</mosaic_0001>

<bundles_post_ra>
// kernel: actor_forward.1
= control target key start
LH: loop header
LB: loop body
LE: loop exit
PB: predicated region body
PF: predicated region fallthrough
CT: control target
= control target key end

     0   :  { %12 = vsyncpa [#allocation3], 0  ;;  %s830_s0 = inlined_call_operand.hbm [shape: f32[8,32], index: 0, kind: input, shape index: {}]   ;;  %s831_s1 = inlined_call_operand.hbm [shape: bf16[32,128], index: 1, kind: input, shape index: {}]   ;;  %s832_s2 = inlined_call_operand.vmem [shape: f32[1,128], index: 2, kind: input, shape index: {}]   ;;  %s833_s3 = inlined_call_operand.hbm [shape: bf16[128,256], index: 3, kind: input, shape index: {}]   ;;  %s834_s4 = inlined_call_operand.vmem [shape: f32[1,256], index: 4, kind: input, shape index: {}]   ;;  %s835_s5 = inlined_call_operand.hbm [shape: bf16[256,128], index: 5, kind: input, shape index: {}]   ;;  %s836_s6 = inlined_call_operand.vmem [shape: f32[1,128], index: 6, kind: input, shape index: {}]   ;;  %s837_s7 = inlined_call_operand.hbm [shape: f32[8,8], index: 7, kind: output, shape index: {}]  }
   0x1   :  { %13 = vsyncpa [#allocation6], 0 }
   0x2   :  { %14 = vsyncpa [#allocation9], 0 }
   0x3   :  { %15 = vsyncpa [#allocation4], 0  ;;  %s748_s24 = smov [#allocation5]  }
   0x4   :  { %s31_s25 = sshll.u32 %s748_s24, 4  ;;  %s32_s25 = int_to_ptr.vmem [resolvable:$true] %s31_s25 }
   0x5   :  { %s648_s26 = scalar_lea.vmem %s32_s25, 256  ;;  %p653_p1 = scmp.lt.s32.totalorder %s32_s25, %s32_s25 }
   0x6   :  { %p649_p0 = scmp.ne.s32.totalorder %s32_s25, %s648_s26  ;;  %p654_p2 = scmp.lt.s32.totalorder %s648_s26, %s648_s26 }
   0x8   :  { %p655_p3 = por %p654_p2, %p653_p1 }
   0xa   :  { %p656_p4 = pnand %p655_p3, %p649_p0 }
   0xc   :  { %659 = shalt.err (!%p656_p4)
}
   0xd   :  { %s749_s27 = smov 64   ;;  %s750_s28 = smov 4  }
   0xe   :  { %37 = dma.hbm_to_vmem [thread:$0]  %s831_s1, 256, %s32_s25, [#allocation6], %s749_s27, %s749_s27, %s750_s28  }
   0xf   :  { %s751_s8 = smov [#allocation2]   ;;  %s752_s10 = smov [#allocation7]  }
  0x10   :  { %s22_s9 = sshll.u32 %s751_s8, 4  ;;  %s45_s11 = sshll.u32 %s752_s10, 4  ;;  %s23_s9 = int_to_ptr.vmem [resolvable:$true] %s22_s9  ;;  %s46_s11 = int_to_ptr.vmem [resolvable:$true] %s45_s11 }
  0x11   :  { %s668_s12 = scalar_lea.vmem %s23_s9, 128  ;;  %p673_p6 = scmp.lt.s32.totalorder %s23_s9, %s23_s9 }
  0x12   :  { %p669_p5 = scmp.ne.s32.totalorder %s23_s9, %s668_s12  ;;  %p674_p7 = scmp.lt.s32.totalorder %s668_s12, %s668_s12 }
  0x14   :  { %p675_p8 = por %p674_p7, %p673_p6 }
  0x16   :  { %p676_p9 = pnand %p675_p8, %p669_p5 }
  0x18   :  { %679 = shalt.err (!%p676_p9)
}
  0x19   :  { %25 = dma.hbm_to_vmem [thread:$0]  %s830_s0, 128, %s23_s9, [#allocation3]  }
  0x1a   :  { %s688_s15 = scalar_lea.vmem %s46_s11, 2048  ;;  %p693_p11 = scmp.lt.s32.totalorder %s46_s11, %s46_s11 }
  0x1b   :  { %p689_p10 = scmp.ne.s32.totalorder %s46_s11, %s688_s15  ;;  %p694_p12 = scmp.lt.s32.totalorder %s688_s15, %s688_s15 }
  0x1d   :  { %p695_p13 = por %p694_p12, %p693_p11 }
  0x1f   :  { %p696_p0 = pnand %p695_p13, %p689_p10 }
  0x21   :  { %699 = shalt.err (!%p696_p0)
}
  0x22   :  { %s753_s1 = smov 128   ;;  %s754_s16 = smov 8  }
  0x23   :  { %51 = dma.hbm_to_vmem [thread:$0]  %s833_s3, 2048, %s46_s11, [#allocation6], %s753_s1, %s753_s1, %s754_s16  }
  0x24   :  { %s755_s19 = smov [#allocation8]  }
  0x25   :  { %s59_s20 = sshll.u32 %s755_s19, 4  ;;  %s60_s20 = int_to_ptr.vmem [resolvable:$true] %s59_s20 }
  0x26   :  { %s708_s21 = scalar_lea.vmem %s60_s20, 2048  ;;  %p713_p2 = scmp.lt.s32.totalorder %s60_s20, %s60_s20 }
  0x27   :  { %p709_p1 = scmp.ne.s32.totalorder %s60_s20, %s708_s21  ;;  %p714_p3 = scmp.lt.s32.totalorder %s708_s21, %s708_s21 }
  0x29   :  { %p715_p4 = por %p714_p3, %p713_p2 }
  0x2b   :  { %p716_p5 = pnand %p715_p4, %p709_p1 }
  0x2d   :  { %719 = shalt.err (!%p716_p5)
}
  0x2e   :  { %65 = dma.hbm_to_vmem [thread:$0]  %s835_s5, 2048, %s60_s20, [#allocation9], %s749_s27, %s749_s27, %s750_s28  }
  0x2f   :  { %740 = dma.done.wait [#allocation3], 128  }
  0x30   :  { %741 = vsyncadd [#allocation3], 4294967168 }
  0x31   :  { %742 = dma.done.wait [#allocation6], 2304  }
  0x32   :  { %743 = vsyncadd [#allocation6], 4294964992 }
  0x33   :  { %744 = dma.done.wait [#allocation9], 2048  }
  0x34   :  { %745 = vsyncadd [#allocation9], 4294965248  ;;  %v756_v0 = vmov 0.0   ;;  %vm757_vm0 = vmmov 0   ;;  %v594_v1 = vld [vmem:[#allocation5 + $0x8] sm:$0xff]   ;;  %v595_v2 = vld [vmem:[#allocation5] sm:$0xff]   ;;  %v170_v46 = vlaneseq }
  0x35   :  { %574 = vmatprep.subr.bf16.mxu0 %v756_v0  ;;  %578 = vmatprep.mubr.msk.bf16.mxu0 %vm757_vm0, %v756_v0  ;;  %v81_v3 = vld [vmem:[#allocation2] sm:$0xff]  ;;  %v596_v4 = vld [vmem:[#allocation7 + $0x74] ss:$8 sps:$4 sm:$0xff]   ;;  %v598_v5 = vld [vmem:[#allocation7 + $0x70] ss:$8 sps:$4 sm:$0xff]   ;;  %vm106_vm1 = vcmask 261120  }
  0x36   :  { %575 = vmatpush3.bf16.msra.mxu0 %v594_v1  ;;  %v599_v6 = vld [vmem:[#allocation7 + $0x64] ss:$8 sps:$4 sm:$0xff]   ;;  %v82_v7 = vpack.c.bf16 %v81_v3, %v81_v3  ;;  %260 = vmatprep.subr.bf16.mxu1 %v596_v4  ;;  %v601_v8 = vld [vmem:[#allocation7 + $0x60] ss:$8 sps:$4 sm:$0xff]   ;;  %v602_v9 = vld [vmem:[#allocation7 + $0x54] ss:$8 sps:$4 sm:$0xff]  }
  0x37   :  { %576 = vmatprep.subr.bf16.mxu0 %v756_v0  ;;  %261 = vmatpush1.bf16.msra.mxu1 %v598_v5  ;;  %v604_v10 = vld [vmem:[#allocation7 + $0x50] ss:$8 sps:$4 sm:$0xff]   ;;  %v605_v11 = vld [vmem:[#allocation7 + $0x44] ss:$8 sps:$4 sm:$0xff]   ;;  %v607_v12 = vld [vmem:[#allocation7 + $0x40] ss:$8 sps:$4 sm:$0xff]  }
  0x38   :  { %262 = vmatprep.subr.bf16.mxu1 %v599_v6  ;;  %v608_v13 = vld [vmem:[#allocation7 + $0x34] ss:$8 sps:$4 sm:$0xff]   ;;  %v610_v14 = vld [vmem:[#allocation7 + $0x30] ss:$8 sps:$4 sm:$0xff]   ;;  %v611_v15 = vld [vmem:[#allocation7 + $0x24] ss:$8 sps:$4 sm:$0xff]  }
  0x39   :  { %v613_v16 = vld [vmem:[#allocation7 + $0x20] ss:$8 sps:$4 sm:$0xff]   ;;  %v614_v17 = vld [vmem:[#allocation7 + $0x14] ss:$8 sps:$4 sm:$0xff]   ;;  %v616_v18 = vld [vmem:[#allocation7 + $0x10] ss:$8 sps:$4 sm:$0xff]  }
  0x3a   :  { %577 = vmatpush3.bf16.msra.mxu0 %v595_v2  ;;  %v617_v19 = vld [vmem:[#allocation7 + $0x4] ss:$8 sps:$4 sm:$0xff]   ;;  %v619_v20 = vld [vmem:[#allocation7] ss:$8 sps:$4 sm:$0xff]   ;;  %v758_v21 = vmov 0   ;;  %v620_v22 = vld [vmem:[#allocation8 + $0x78] sm:$0xff]  }
  0x3b   :  { %263 = vmatpush1.bf16.msra.mxu1 %v601_v8  ;;  %292 = vmatprep.mubr.bf16.mxu1 %v758_v21  ;;  %v621_v23 = vld [vmem:[#allocation8 + $0x38] sm:$0xff]   ;;  %v622_v24 = vld [vmem:[#allocation8 + $0x70] sm:$0xff]   ;;  %v624_v26 = vld [vmem:[#allocation8 + $0x68] sm:$0xff]   ;;  %v171_v47 = vshrl.u32 %v170_v46, 7  ;;  %v481_v0 = vand.u32 127, %v170_v46  ;;  %s759_s25 = smov [#allocation10]  }
  0x3c   :  { %264 = vmatprep.subr.bf16.mxu1 %v602_v9  ;;  %552 = vmatprep.subr.bf16.mxu0 %v620_v22  ;;  %v623_v25 = vld [vmem:[#allocation8 + $0x30] sm:$0xff]   ;;  %v625_v27 = vld [vmem:[#allocation8 + $0x28] sm:$0xff]   ;;  %v626_v28 = vld [vmem:[#allocation8 + $0x60] sm:$0xff]   ;;  %s501_s26 = sshll.u32 %s759_s25, 4  ;;  %vm493_vm3 = vcmask 64512   ;;  %s502_s26 = int_to_ptr.vmem [resolvable:$true] %s501_s26 }
  0x3d   :  { %579 = vmatmul.mubr.msk.bf16.vlgmr.msra.gmra.mxu0 %vm106_vm1, %v82_v7  ;;  %v627_v29 = vld [vmem:[#allocation8 + $0x20] sm:$0xff]   ;;  %v628_v30 = vld [vmem:[#allocation8 + $0x58] sm:$0xff]   ;;  %v630_v32 = vld [vmem:[#allocation8 + $0x50] sm:$0xff]   ;;  %v172_v48 = vsub.s32 0, %v171_v47  ;;  %v176_v50 = vsub.s32 1, %v171_v47  ;;  %vm482_vm2 = vcmp.lt.s32.totalorder %v481_v0, 8  ;;  %p725_p7 = scmp.lt.s32.totalorder %s502_s26, %s502_s26 }
  0x3e   :  { %553 = vmatpush3.bf16.msra.mxu0 %v621_v23  ;;  %v629_v31 = vld [vmem:[#allocation8 + $0x18] sm:$0xff]   ;;  %v631_v33 = vld [vmem:[#allocation8 + $0x10] sm:$0xff]   ;;  %v512_v34 = vld [vmem:[%s832_s2] ss:$0 sm:$0xff] }
  0x3f   :  { %265 = vmatpush1.bf16.msra.mxu1 %v604_v10  ;;  %554 = vmatprep.subr.bf16.mxu0 %v622_v24  ;;  %v632_v42 = vld [vmem:[#allocation8 + $0x48] sm:$0xff]   ;;  %v634_v44 = vld [vmem:[#allocation8 + $0x40] sm:$0xff]  }
  0x40   :  { %266 = vmatprep.subr.bf16.mxu1 %v605_v11  ;;  %v633_v43 = vld [vmem:[#allocation8 + $0x8] sm:$0xff]   ;;  %v635_v45 = vld [vmem:[#allocation8] sm:$0xff]  }
  0x41   :  { %v168_v49 = vld [vmem:[%s834_s4] sm:$0x3] }
  0x42   :  { %555 = vmatpush3.bf16.msra.mxu0 %v623_v25  ;;  %v173_v51 = vrot.slane %v168_v49, %v172_v48  ;;  %v177_v52 = vrot.slane %v168_v49, %v176_v50  ;;  %v532_v2 = vld [vmem:[%s836_s6] ss:$0 sm:$0xff]  ;;  %s720_s6 = scalar_lea.vmem %s502_s26, 128 }
  0x43   :  { %267 = vmatpush1.bf16.msra.mxu1 %v607_v12  ;;  %556 = vmatprep.subr.bf16.mxu0 %v624_v26  ;;  %p721_p6 = scmp.ne.s32.totalorder %s502_s26, %s720_s6  ;;  %p726_p8 = scmp.lt.s32.totalorder %s720_s6, %s720_s6 }
  0x44   :  { %268 = vmatprep.subr.bf16.mxu1 %v608_v13 }
  0x45   :  { %p727_p9 = por %p726_p8, %p725_p7 }
  0x46   :  { %557 = vmatpush3.bf16.msra.mxu0 %v625_v27 }
  0x47   :  { %269 = vmatpush1.bf16.msra.mxu1 %v610_v14  ;;  %558 = vmatprep.subr.bf16.mxu0 %v626_v28  ;;  %p728_p10 = pnand %p727_p9, %p721_p6 }
  0x48   :  { %270 = vmatprep.subr.bf16.mxu1 %v611_v15 }
  0x4a   :  { %559 = vmatpush3.bf16.msra.mxu0 %v627_v29 }
  0x4b   :  { %271 = vmatpush1.bf16.msra.mxu1 %v613_v16  ;;  %560 = vmatprep.subr.bf16.mxu0 %v628_v30 }
  0x4c   :  { %272 = vmatprep.subr.bf16.mxu1 %v614_v17 }
  0x4e   :  { %561 = vmatpush3.bf16.msra.mxu0 %v629_v31 }
  0x4f   :  { %273 = vmatpush1.bf16.msra.mxu1 %v616_v18  ;;  %562 = vmatprep.subr.bf16.mxu0 %v630_v32 }
  0x50   :  { %274 = vmatprep.subr.bf16.mxu1 %v617_v19 }
  0x52   :  { %563 = vmatpush3.bf16.msra.mxu0 %v631_v33 }
  0x53   :  { %275 = vmatpush1.bf16.msra.mxu1 %v619_v20  ;;  %564 = vmatprep.subr.bf16.mxu0 %v632_v42 }
  0x56   :  { %565 = vmatpush3.bf16.msra.mxu0 %v633_v43 }
  0x57   :  { %566 = vmatprep.subr.bf16.mxu0 %v634_v44 }
  0x5a   :  { %567 = vmatpush3.bf16.msra.mxu0 %v635_v45 }
  0xfd   :  { %v144_v35 = vpop.f32.mrf.mxu0 }
  0xfe   :  { %v145_v36 = vadd.f32 %v512_v34, %v144_v35 }
  0xff   :  { %v580_v37 = vpop.f32.mrf.mxu0 }
 0x100   :  { %v150_v38 = vmax.f32 %v145_v36, 0.0 }
 0x101   :  { %v147_v39 = vpop.f32.mrf.mxu0 }
 0x102   :  { %v151_v40 = vpack.c.bf16 %v150_v38, %v150_v38 }
 0x103   :  { %v581_v41 = vpop.f32.mrf.mxu0 }
 0x104   :  { %293 = vmatmul.mubr.bf16.vlgmr.msra.gmra.mxu1 %v151_v40 }
 0x1c4   :  { %v294_v53 = vpop.f32.mrf.mxu1 }
 0x1c5   :  { %v295_v54 = vadd.f32 %v294_v53, %v173_v51 }
 0x1c6   :  { %v296_v55 = vpop.f32.mrf.mxu1 }
 0x1c7   :  { %v297_v56 = vadd.f32 %v296_v55, %v177_v52  ;;  %v301_v57 = vmax.f32 %v295_v54, 0.0 }
 0x1c8   :  { %v298_v58 = vpop.f32.mrf.mxu1 }
 0x1c9   :  { %v302_v59 = vmax.f32 %v297_v56, 0.0  ;;  %v303_v62 = vpack.c.bf16 %v301_v57, %v301_v57 }
 0x1ca   :  { %v299_v60 = vpop.f32.mrf.mxu1 }
 0x1cb   :  { %v304_v61 = vpack.c.bf16 %v302_v59, %v302_v59 }
 0x1cd   :  { %472 = vmatprep.mubr.bf16.mxu0 %v304_v61 }
 0x1ce   :  { %473 = vmatmul.mubr.bf16.vlgmr.msra.gmra.mxu0 %v303_v62 }
 0x28e   :  { %v568_v63 = vpop.f32.mrf.mxu0 }
 0x290   :  { %v569_v1 = vpop.f32.mrf.mxu0 }
 0x291   :  { %v570_v3 = vadd.f32 %v569_v1, %v568_v63 }
 0x292   :  { %v571_v4 = vpop.f32.mrf.mxu0 }
 0x293   :  { %v475_v5 = vadd.f32 %v570_v3, %v532_v2 }
 0x294   :  { %v572_v6 = vpop.f32.mrf.mxu0 }
 0x295   :  { %v483_v7 = vsel %vm482_vm2, %v475_v5, -inf }
 0x296   :  { %484 = vmax.xlane.f32.xlu0 %v483_v7 }
 0x31f   :  { %v485_v8 = vpop.xlane.xlu0 %484 }
 0x320   :  { %v486_v9 = vsub.f32 %v483_v7, %v485_v8 }
 0x322   :  { %v487_v10 = vmul.f32 1.442695, %v486_v9 }
 0x324   :  { %636 = vpow2.f32 %v487_v10 }
 0x331   :  { %v637_v11 = vpop.eup %636 }
 0x332   :  { %489 = vadd.xlane.f32.xlu0 %v637_v11 }
 0x3bb   :  { %v490_v12 = vpop.xlane.xlu0 %489 }
 0x3bc   :  { %638 = vrcp.f32 %v490_v12 }
 0x3c9   :  { %v639_v13 = vpop.eup %638 }
 0x3ca   :  { %v492_v14 = vmul.f32 %v639_v13, %v637_v11 }
 0x3cc   :  { %494 = vst.msk [vmem:[#allocation10] sm:$0xff] %vm493_vm3, %v492_v14 }
 0x3cd   :  { %731 = shalt.err (!%p728_p10)
}
 0x3ce   :  { %504 = dma.vmem_to_hbm [thread:$0]  %s502_s26, 128, %s837_s7, [#allocation4]  }
 0x3cf   :  { %746 = dma.done.wait [#allocation4], 128  }
 0x3d0   :  { %747 = vsyncadd [#allocation4], 4294967168 }
 0x3d1   :  { %508 = vsyncpa [#allocation3], 1 }
 0x3d2   :  { %509 = vsyncpa [#allocation6], 1 }
 0x3d3   :  { %510 = vsyncpa [#allocation9], 1 }
 0x3d4   :  { %511 = vsyncpa [#allocation4], 1 }

</bundles_post_ra>
